<compile_context>
chip_gen: v5e
topology: v5e:2x2
jax: 0.10.0
libtpu: 0.0.40
codegen_flags: <defaults>
</compile_context>

<pallas_src>
import jax
import jax.numpy as jnp
from jax.experimental import pallas as pl
from jax.experimental.pallas import tpu as pltpu

S = 16         # spatial size (PyTorch module hardcodes 256; kept small per instructions)
DEPTH = 5      # torch.stack([input]*5, dim=1)
C1 = 8         # conv1 output channels (stand-in for the MedicalNet backbone width)
NC = 4         # segmentation-head output channels
K3 = 3         # 3x3x3 kernel
KTAPS3D = K3 * K3 * K3   # 27
KTAPS2D = K3 * K3        # 9 (exact fold of the depth taps, see pack_params_t)

KPAD = 16      # contraction dim: 9 taps + 1 ones row, padded to sublane multiple
C1P = 16       # hidden rows: 8 channels + 1 bias channel, padded to 16 sublanes
NCP = 8        # output rows: 4 channels padded to 8 sublanes (lane-dense (8, M) store)


# ---------------------------- Pallas kernel ---------------------------------
def _fused_model_kernel(pt_ref, w1t_ref, w2t_ref, o_ref):
    # conv1 as a transposed im2col matmul (bias folded via the ones row of P^T).
    # hT: (C1P, tile_m) f32 — M stays on the lane axis throughout.
    h = jnp.dot(w1t_ref[...], pt_ref[...], preferred_element_type=jnp.float32)
    h = jnp.maximum(h, 0.0)  # ReLU in f32 (bias channel stays exactly 1.0)
    # 1x1x1 conv_seg head (bias folded via the constant hidden bias channel).
    # Lane-dense (NCP, tile_m) f32 store.
    o_ref[...] = jnp.dot(w2t_ref[...], h.astype(w2t_ref.dtype),
                         preferred_element_type=jnp.float32)


def _pick_tile_m(M):
    # Prefer large tiles (amortize per-step pipeline overhead) while keeping the
    # grid >= 2 (shards across v7x's two TensorCores; even counts at real scale:
    # M=16384 -> tile_m=4096 -> grid=4).  Fallback: single full-extent block
    # (small-scale path; last block dim equal to the array dim is always legal).
    for t in (4096, 2048, 1024, 512, 256, 128):
        if M % t == 0 and M // t >= 2:
            return t
    return M


def fused_model(pt, w1t, w2t):
    kpad, M = pt.shape
    tile_m = _pick_tile_m(M)
    grid = (M // tile_m,)
    return pl.pallas_call(
        _fused_model_kernel,
        out_shape=jax.ShapeDtypeStruct((NCP, M), jnp.float32),
        grid_spec=pltpu.PrefetchScalarGridSpec(
            num_scalar_prefetch=0,
            grid=grid,
            in_specs=[
                pl.BlockSpec((kpad, tile_m), lambda i: (0, i)),   # patch^T tile stream
                pl.BlockSpec((C1P, kpad), lambda i: (0, 0)),      # resident conv1 weights
                pl.BlockSpec((NCP, C1P), lambda i: (0, 0)),       # resident head weights
            ],
            out_specs=pl.BlockSpec((NCP, tile_m), lambda i: (0, i)),
        ),
        compiler_params=pltpu.CompilerParams(
            dimension_semantics=("parallel",),
            vmem_limit_bytes=32 * 1024 * 1024,  # safe on v5e/v6e/v7x; working set << this
        ),
    )(pt, w1t, w2t)


# ------------------------------ JAX glue -------------------------------------
def im2col_depth0_2d(plane):
    """plane: (H, W) -> P^T of shape (9, Ho*Wo) for the spatial part of the
    conv3d (3x3, stride 2, pad 1) at output depth 0.  Taps stacked on axis 0 so
    the kernel output reshapes to (NC, Ho, Wo) with no transpose."""
    H, W = plane.shape
    xp = jnp.pad(plane, ((1, 1), (1, 1)))
    Ho = (H + 2 - K3) // 2 + 1
    Wo = (W + 2 - K3) // 2 + 1
    taps = []
    for kh in range(K3):
        for kw in range(K3):
            sl = jax.lax.slice(
                xp, (kh, kw),
                (kh + (Ho - 1) * 2 + 1, kw + (Wo - 1) * 2 + 1),
                (2, 2))
            taps.append(sl.reshape(-1))
    return jnp.stack(taps, axis=0), (Ho, Wo)   # (9, M)


def build_patches_t(plane):
    Pt, (Ho, Wo) = im2col_depth0_2d(plane)                 # (9, M) f32
    M = Pt.shape[1]
    ones = jnp.ones((1, M), Pt.dtype)                      # ones row folds b1
    Ptp = jnp.concatenate([Pt, ones], axis=0)              # (10, M)
    Ptp = jnp.pad(Ptp, ((0, KPAD - KTAPS2D - 1), (0, 0)))  # pad K to 16
    return Ptp.astype(jnp.bfloat16), (Ho, Wo)


def pack_params_t(w1, b1, w2, b2):
    """Transposed, channel-padded weights with biases folded in.

    Depth fold (exact): output depth 0 sees padded depths {0(zero-pad), 1, 2};
    the volume is DEPTH identical copies of the input, so original depths 0 and
    1 are the same plane and w1_eff = w1[kd=1] + w1[kd=2] (kd=0 taps see zeros).

    Row KTAPS2D of the contraction (the ones row of P^T) carries b1; hidden row
    C1 is a constant bias channel (value 1 after ReLU) whose w2t column is b2."""
    w1_eff = w1[KTAPS2D:2 * KTAPS2D] + w1[2 * KTAPS2D:3 * KTAPS2D]   # (9, C1)

    w1t = jnp.zeros((C1P, KPAD), jnp.float32)
    w1t = w1t.at[:C1, :KTAPS2D].set(w1_eff.T)
    w1t = w1t.at[:C1, KTAPS2D].set(b1.reshape(-1))
    w1t = w1t.at[C1, KTAPS2D].set(1.0)

    w2t = jnp.zeros((NCP, C1P), jnp.float32)
    w2t = w2t.at[:NC, :C1].set(w2.T)
    w2t = w2t.at[:NC, C1].set(b2.reshape(-1))
    return w1t.astype(jnp.bfloat16), w2t.astype(jnp.bfloat16)


def nearest_exact_upsample_2d(x, out_hw):
    """PyTorch F.interpolate(mode='nearest-exact') on the last two axes."""
    Hin, Win = x.shape[-2], x.shape[-1]
    Hout, Wout = out_hw

    def idx(out_size, in_size):
        scale = in_size / out_size
        i = jnp.floor((jnp.arange(out_size, dtype=jnp.float32) + 0.5) * scale)
        return jnp.clip(i.astype(jnp.int32), 0, in_size - 1)

    x = jnp.take(x, idx(Hout, Hin), axis=-2)
    x = jnp.take(x, idx(Wout, Win), axis=-1)
    return x


def auxnet_forward(inp, params):
    # inp: (1, S, S)   (PyTorch: (1, 256, 256))
    # x = torch.stack([input]*5, dim=1) -> (1, 5, S, S); reshape -> (1, 1, 5, S, S)
    assert DEPTH >= 2, "depth-0 tap fold assumes >=2 identical stacked planes"
    x = jnp.stack([inp for _ in range(DEPTH)], axis=1)
    x = jnp.reshape(x, (1, 1, DEPTH, S, S))

    # --- self.model(x) ---
    # TODO(synk): the pretrained MedicalNet 3D-ResNet (generate_model + torch.load
    # checkpoint) has no in-script equivalent; it is replaced by a deterministic
    # 2-layer 3D conv stand-in (conv3d 3x3x3 stride (1,2,2) pad 1 + ReLU + 1x1x1 head),
    # whose hot path runs in the fused Pallas kernel above.
    #
    # Downstream consumes only y[:, 0, :, :] == output depth plane 0.  That plane's
    # depth receptive field is padded depths {zero-pad, inp, inp}, so the 27-tap
    # 3D kernel folds exactly to 9 2-D taps on the single input plane (see
    # pack_params_t).  This is exact ONLY because of the stack([input]*5)
    # construction + zero depth padding + the y[:, 0] slice.
    plane = x[0, 0, 0]                                            # (S, S) == inp[0]

    pt, (Ho, Wo) = build_patches_t(plane)                         # (16, M) bf16
    w1t, w2t = pack_params_t(params["w1"], params["b1"], params["w2"], params["b2"])

    ot = fused_model(pt, w1t, w2t)                                # (8, M) lane-dense f32
    o = ot[:NC].reshape(NC, Ho, Wo)                               # no transpose needed

    # y = F.interpolate(x[0], size=(S, S), mode='nearest-exact'); y[:, 0, :, :]
    # selects exactly the depth-0 plane computed above.
    y = nearest_exact_upsample_2d(o, (S, S))                      # (NC, S, S)
    return y[None, :, :, :]                                       # (1, NC, S, S)


# --------------------------- pure-JAX reference -------------------------------
def im2col_depth0_3d(x):
    """Full 27-tap im2col of the 3D stand-in conv at output depth 0 (f32 reference;
    independently validates the 27->9 tap fold used by the kernel path)."""
    D, H, W = x.shape
    xp = jnp.pad(x, ((1, 1), (1, 1), (1, 1)))
    Ho = (H + 2 - K3) // 2 + 1
    Wo = (W + 2 - K3) // 2 + 1
    taps = []
    for kd in range(K3):            # padded depths 0..2 == original depths -1..1
        for kh in range(K3):
            for kw in range(K3):
                sl = jax.lax.slice(
                    xp,
                    (kd, kh, kw),
                    (kd + 1, kh + (Ho - 1) * 2 + 1, kw + (Wo - 1) * 2 + 1),
                    (1, 2, 2))
                taps.append(sl[0])
    P = jnp.stack(taps, axis=-1).reshape(Ho * Wo, KTAPS3D)
    return P, (Ho, Wo)


def auxnet_forward_ref(inp, params):
    """Pure-JAX f32 reference of the same stand-in forward (no fold/padding/bf16)."""
    x = jnp.stack([inp for _ in range(DEPTH)], axis=1).reshape(1, 1, DEPTH, S, S)
    P, (Ho, Wo) = im2col_depth0_3d(x[0, 0])
    h = jnp.maximum(P @ params["w1"] + params["b1"].reshape(1, -1), 0.0)
    o = h @ params["w2"] + params["b2"].reshape(1, -1)
    o = o.reshape(Ho, Wo, NC).transpose(2, 0, 1)
    y = nearest_exact_upsample_2d(o, (S, S))
    return y[None]


def init_params(key):
    k1, k2, k3, k4 = jax.random.split(key, 4)
    return dict(
        w1=jax.random.normal(k1, (KTAPS3D, C1), jnp.float32) * 0.1,
        b1=jax.random.normal(k2, (C1,), jnp.float32) * 0.01,
        w2=jax.random.normal(k3, (C1, NC), jnp.float32) * 0.1,
        b2=jax.random.normal(k4, (NC,), jnp.float32) * 0.01,
    )


if __name__ == "__main__":
    key = jax.random.PRNGKey(0)
    kx, kp = jax.random.split(key)
    inp = jax.random.normal(kx, (1, S, S), jnp.float32)
    params = init_params(kp)

    out = jax.jit(auxnet_forward)(inp, params)
    out = jax.block_until_ready(out)
    assert out.shape == (1, NC, S, S), out.shape
    assert bool(jnp.all(jnp.isfinite(out)))

    ref = auxnet_forward_ref(inp, params)
    max_err = float(jnp.max(jnp.abs(out - ref)))
    assert bool(jnp.allclose(out, ref, atol=5e-2, rtol=5e-2)), max_err
    print("KERNEL_OK")
</pallas_src>

<mosaic_0001>
module attributes {stable_mosaic.version = 11 : i64} {
  func.func @_fused_model_kernel(%arg0: i32, %arg1: memref<16x64xbf16, #tpu.memory_space<vmem>>, %arg2: memref<16x16xbf16, #tpu.memory_space<vmem>>, %arg3: memref<8x16xbf16, #tpu.memory_space<vmem>>, %arg4: memref<8x64xf32, #tpu.memory_space<vmem>>) attributes {dimension_semantics = [#tpu.dimension_semantics<parallel>], iteration_bounds = array<i64: 1>, scalar_prefetch = 0 : i64, scratch_operands = 0 : i64, tpu.core_type = #tpu.core_type<tc>, window_params = [{transform_indices = @transform_0, window_bounds = array<i64: 16, 64>}, {pipeline_mode = #tpu.pipeline_mode<synchronous>, transform_indices = @transform_1, window_bounds = array<i64: 16, 16>}, {pipeline_mode = #tpu.pipeline_mode<synchronous>, transform_indices = @transform_2, window_bounds = array<i64: 8, 16>}, {transform_indices = @transform_3, window_bounds = array<i64: 8, 64>}]} {
    %c0 = arith.constant 0 : index
    %c0_0 = arith.constant 0 : index
    %0 = vector.load %arg2[%c0, %c0_0] : memref<16x16xbf16, #tpu.memory_space<vmem>>, vector<16x16xbf16>
    %c0_1 = arith.constant 0 : index
    %c0_2 = arith.constant 0 : index
    %1 = vector.load %arg1[%c0_1, %c0_2] : memref<16x64xbf16, #tpu.memory_space<vmem>>, vector<16x64xbf16>
    %cst = arith.constant dense<0.000000e+00> : vector<16x64xf32>
    %2 = tpu.matmul %0, %1, %cst {dimension_numbers = #tpu.dot_dimension_numbers<[1], [0], [0], [1], [0, 0, 1, 1], [], []>} : vector<16x16xbf16>, vector<16x64xbf16>, vector<16x64xf32> -> vector<16x64xf32>
    %cst_3 = arith.constant 0.000000e+00 : f32
    %3 = vector.broadcast %cst_3 : f32 to vector<16x64xf32>
    %4 = arith.maximumf %2, %3 : vector<16x64xf32>
    %c0_4 = arith.constant 0 : index
    %c0_5 = arith.constant 0 : index
    %5 = vector.load %arg3[%c0_4, %c0_5] : memref<8x16xbf16, #tpu.memory_space<vmem>>, vector<8x16xbf16>
    %6 = arith.truncf %4 : vector<16x64xf32> to vector<16x64xbf16>
    %cst_6 = arith.constant dense<0.000000e+00> : vector<8x64xf32>
    %7 = tpu.matmul %5, %6, %cst_6 {dimension_numbers = #tpu.dot_dimension_numbers<[1], [0], [0], [1], [0, 0, 1, 1], [], []>} : vector<8x16xbf16>, vector<16x64xbf16>, vector<8x64xf32> -> vector<8x64xf32>
    %c0_7 = arith.constant 0 : index
    %c0_8 = arith.constant 0 : index
    %8 = vector.load %arg4[%c0_7, %c0_8] : memref<8x64xf32, #tpu.memory_space<vmem>>, vector<8x64xf32>
    tpu.vector_store %arg4[%c0_7, %c0_8], %7 {strides = array<i32>} : memref<8x64xf32, #tpu.memory_space<vmem>>, vector<8x64xf32>,
    return
  }
  func.func @transform_0(%arg0: i32) -> (i32, i32) {
    %c0_i32 = arith.constant 0 : i32
    %c0_i32_0 = arith.constant 0 : i32
    return %c0_i32, %arg0 : i32, i32
  }
  func.func @transform_1(%arg0: i32) -> (i32, i32) {
    %c0_i32 = arith.constant 0 : i32
    %c0_i32_0 = arith.constant 0 : i32
    %c0_i32_1 = arith.constant 0 : i32
    return %c0_i32, %c0_i32_0 : i32, i32
  }
  func.func @transform_2(%arg0: i32) -> (i32, i32) {
    %c0_i32 = arith.constant 0 : i32
    %c0_i32_0 = arith.constant 0 : i32
    %c0_i32_1 = arith.constant 0 : i32
    return %c0_i32, %c0_i32_0 : i32, i32
  }
  func.func @transform_3(%arg0: i32) -> (i32, i32) {
    %c0_i32 = arith.constant 0 : i32
    %c0_i32_0 = arith.constant 0 : i32
    return %c0_i32, %arg0 : i32, i32
  }
}

</mosaic_0001>

<bundles_post_ra>
// kernel: auxnet_forward.1
= control target key start
LH: loop header
LB: loop body
LE: loop exit
PB: predicated region body
PF: predicated region fallthrough
CT: control target
= control target key end

     0   :  { %vm30_vm0 = vcmask 130048   ;;  %vm68_vm1 = vcmask 523264   ;;  %s118_s0 = inlined_call_operand.vmem [shape: bf16[16,64], index: 0, kind: input, shape index: {}]   ;;  %s119_s1 = inlined_call_operand.vmem [shape: bf16[16,16], index: 1, kind: input, shape index: {}]   ;;  %s120_s2 = inlined_call_operand.vmem [shape: bf16[8,16], index: 2, kind: input, shape index: {}]   ;;  %s121_s3 = inlined_call_operand.vmem [shape: f32[8,64], index: 3, kind: output, shape index: {}]  }
   0x1   :  { %v85_v0 = vld [vmem:[%s118_s0] sm:$0xff] }
   0x2   :  { %v84_v1 = vld [vmem:[%s119_s1] sm:$0xff]  ;;  %41 = vmatpush.bf16.msra.mxu0 %v85_v0 }
   0x3   :  { %v50_v7 = vld [vmem:[%s120_s2] sm:$0xf] }
   0x5   :  { %82 = vmatmul.msk.bf16.vlgmr.msra.gmra.mxu0 %vm30_vm0, %v84_v1 }
  0x82   :  { %v43_v2 = vpop.f32.mrf.mxu0 }
  0x83   :  { %v48_v4 = vmax.f32 %v43_v2, 0.0 }
  0x8a   :  { %v45_v3 = vpop.f32.mrf.mxu0 }
  0x8b   :  { %v49_v5 = vmax.f32 %v45_v3, 0.0 }
  0x8d   :  { %v51_v6 = vpack.c.bf16 %v49_v5, %v48_v4 }
  0x8f   :  { %62 = vmatpush.bf16.msra.mxu1 %v51_v6 }
  0x92   :  { %83 = vmatmul.msk.bf16.vlgmr.msra.gmra.mxu1 %vm30_vm0, %v50_v7 }
 0x10f   :  { %v64_v8 = vpop.f32.mrf.mxu1 }
 0x110   :  { %69 = vst.msk [vmem:[%s121_s3] sm:$0xff] %vm68_vm1, %v64_v8 }
 0x117   :  { %v66_v9 = vpop.f32.mrf.mxu1 }

</bundles_post_ra>
